<compile_context>
chip_gen: v7x
topology: tpu7x:2x2x1
jax: 0.10.0
libtpu: 0.0.40
codegen_flags: <defaults>
</compile_context>

<pallas_src>
import functools

import jax
import jax.numpy as jnp
import numpy as np
from jax.experimental import pallas as pl
from jax.experimental.pallas import tpu as pltpu


# ----------------------------------------------------------------------------
# Pallas kernel: 1x1 conv + ReLU + BN + fused (crop ∘ bilinear ∘ nearest-2x).
# ----------------------------------------------------------------------------
def _upblock_kernel(x_ref, w_ref, p_ref, m_ref, o_ref):
  # x_ref : (1, C, Hd*Wd)   decoder features, spatially flattened (NOT upsampled)
  # w_ref : (Cb, C)         1x1 conv weight block (Cb output channels)
  # p_ref : (Cout, 3)       full packed [bias, bn_scale, bn_shift] table (f32)
  # m_ref : (Hd*Wd, P*Q)    fused resize matrix (nearest-dup + bilinear + crop)
  # o_ref : (1, Cb, P*Q)    lane-dense output block == an NCHW channel block
  cb = w_ref.shape[0]
  compute_dtype = m_ref.dtype

  # 1x1 conv as one MXU matmul over flattened spatial; f32 accumulation.
  y = jnp.dot(w_ref[...], x_ref[0],
              preferred_element_type=jnp.float32)            # (cb, Hd*Wd)

  # Per-channel bias + ReLU + eval-BN epilogue (f32 VPU; v5e has no bf16 VALU).
  # The parameter table is resident (constant index_map); slice this block's
  # rows instead of issuing a tiny per-step DMA.
  start = pl.multiple_of(pl.program_id(1) * cb, cb)
  p = p_ref[pl.ds(start, cb), :]                              # (cb, 3)
  y = jnp.maximum(y + p[:, 0:1], 0.0)                         # conv bias + ReLU
  y = y * p[:, 1:2] + p[:, 2:3]                               # eval BatchNorm

  # Row+column bilinear resize + edge crop in one MXU matmul, no relayout.
  out = jnp.dot(y.astype(compute_dtype), m_ref[...],
                preferred_element_type=jnp.float32)           # (cb, P*Q)
  o_ref[0] = out.astype(o_ref.dtype)


# ----------------------------------------------------------------------------
# Trace-time interpolation matrices (PyTorch bilinear, align_corners=True).
# ----------------------------------------------------------------------------
def _bilinear_matrix(in_size, out_size):
  idx = np.arange(out_size, dtype=np.float64)
  if out_size > 1:
    src = idx * (in_size - 1) / (out_size - 1)
  else:
    src = np.zeros_like(idx)
  i0 = np.clip(np.floor(src), 0, in_size - 1).astype(np.int64)
  i1 = np.clip(i0 + 1, 0, in_size - 1)
  frac = src - i0
  m = np.zeros((out_size, in_size), dtype=np.float64)
  rows = np.arange(out_size)
  np.add.at(m, (rows, i0), 1.0 - frac)
  np.add.at(m, (rows, i1), frac)
  return m


def _auto_cout_block(cout, n_batch):
  """Largest divisor of Cout that is a multiple of 8 (or Cout itself), <=256,
  preferring >=2 grid steps when N == 1 so both v7x TensorCores get work."""
  cands = sorted({d for d in range(1, cout + 1)
                  if cout % d == 0 and (d % 8 == 0 or d == cout) and d <= 256},
                 reverse=True)
  if not cands:
    return cout
  if n_batch == 1 and cands[0] == cout and len(cands) > 1:
    return cands[1]
  return cands[0]


def _vmem_limit_bytes(C, hw, pq, cout, cout_block, compute_dtype, out_dtype):
  cdt = jnp.dtype(compute_dtype).itemsize
  odt = jnp.dtype(out_dtype).itemsize
  est = 2 * (C * hw * cdt               # x block (double-buffered)
             + cout_block * C * cdt     # W block
             + hw * pq * cdt            # fused resize matrix
             + cout * 3 * 4)            # parameter table
  est += 2 * cout_block * pq * odt      # output block (double-buffered)
  est += cout_block * (hw + pq) * 4     # f32 intermediates y / out
  # Raise past v5e's 16 MiB scoped default; stay well under v7x's 64 MiB.
  return int(min(max(2 * est, 32 << 20), 48 << 20))


# ----------------------------------------------------------------------------
# Wrapper reproducing _UpSampleBlockTri.forward.
# ----------------------------------------------------------------------------
@functools.partial(jax.jit,
                   static_argnames=("edge_opt", "cout_block", "compute_dtype"))
def upsample_block_tri(x_de, x_en, x_pre, params, edge_opt=True,
                       cout_block=None, compute_dtype=jnp.float32):
  N, C, Hd, Wd = x_de.shape
  h, w = x_en.shape[-2], x_en.shape[-1]
  H2, W2 = 2 * Hd, 2 * Wd              # h_edge, w_edge in the PyTorch module
  Cout = params["w"].shape[0]

  if edge_opt:
    hp, wp = x_pre.shape[-2], x_pre.shape[-1]
    if h < H2 + 2 or w < W2 + 2 or hp < H2 + 2 or wp < W2 + 2:
      raise ValueError(
          f"edge_opt crop needs x_en/x_pre spatial >= ({H2 + 2}, {W2 + 2}); "
          f"got x_en ({h}, {w}), x_pre ({hp}, {wp})")

  if cout_block is None:
    cout_block = _auto_cout_block(Cout, N)
  if Cout % cout_block != 0 or not (cout_block % 8 == 0 or cout_block == Cout):
    raise ValueError(f"cout_block={cout_block} must divide Cout={Cout} and be "
                     f"a multiple of 8 (or equal Cout)")
  n_cb = Cout // cout_block

  # Bilinear (align_corners=True) matrices on the 2x-upsampled grid; fold in
  # the edge crop by row selection and the nearest-2x duplication by column
  # pairing (valid because the 1x1 conv / ReLU / BN are pointwise), then fuse
  # row and column resizes into one (Hd*Wd, P*Q) matrix.
  A = _bilinear_matrix(H2, h)                       # (h, H2)
  B = _bilinear_matrix(W2, w)                       # (w, W2)
  if edge_opt:
    A = A[2:H2 + 2]                                 # (P, H2)
    B = B[2:W2 + 2]                                 # (Q, W2)
  A = A.reshape(A.shape[0], Hd, 2).sum(-1)          # (P, Hd)
  B = B.reshape(B.shape[0], Wd, 2).sum(-1)          # (Q, Wd)
  P, Q = A.shape[0], B.shape[0]
  M = np.einsum("ph,qw->hwpq", A, B).reshape(Hd * Wd, P * Q)

  # Lane-dense, relayout-free operand prep (free HBM reshapes).
  x_flat = x_de.reshape(N, C, Hd * Wd).astype(compute_dtype)
  w_mat = params["w"].astype(compute_dtype)
  bss = jnp.stack([params["b"], params["scale"], params["shift"]],
                  axis=1).astype(jnp.float32)       # (Cout, 3)
  M_j = jnp.asarray(M, dtype=compute_dtype)

  vmem_limit = _vmem_limit_bytes(C, Hd * Wd, P * Q, Cout, cout_block,
                                 compute_dtype, x_de.dtype)

  out_flat = pl.pallas_call(
      _upblock_kernel,
      out_shape=jax.ShapeDtypeStruct((N, Cout, P * Q), x_de.dtype),
      grid=(N, n_cb),
      in_specs=[
          pl.BlockSpec((1, C, Hd * Wd), lambda n, c: (n, 0, 0)),
          pl.BlockSpec((cout_block, C), lambda n, c: (c, 0)),
          pl.BlockSpec((Cout, 3), lambda n, c: (0, 0)),        # resident table
          pl.BlockSpec((Hd * Wd, P * Q), lambda n, c: (0, 0)),  # resident M
      ],
      out_specs=pl.BlockSpec((1, cout_block, P * Q), lambda n, c: (n, c, 0)),
      compiler_params=pltpu.CompilerParams(
          dimension_semantics=("parallel", "parallel"),
          vmem_limit_bytes=vmem_limit),
  )(x_flat, w_mat, bss, M_j)

  # (N, Cout, P*Q) -> (N, Cout, P, Q): pure metadata, no HBM transpose pass.
  x_de_out = out_flat.reshape(N, Cout, P, Q)

  if edge_opt:
    x_en = x_en[:, :, 2:H2 + 2, 2:W2 + 2]
    x_pre = x_pre[:, :, 2:H2 + 2, 2:W2 + 2]
  # TODO(synk): the decoder-branch copy in this concat could be removed by
  # writing into a preallocated concat buffer via input_output_aliases.
  return jnp.concatenate([x_en, x_de_out.astype(x_en.dtype), x_pre], axis=1)


# Pure-JAX reference of the x_de branch in the ORIGINAL op order (explicit
# nearest-2x upsample; only the crop is folded into A_c/B_c) — validates the
# algebraic fold used by the kernel.
def _ref_de_branch(x_de, params, A_c, B_c):
  x_up = jnp.repeat(jnp.repeat(x_de, 2, axis=2), 2, axis=3)
  y = jnp.einsum("oc,nchw->nohw", params["w"], x_up)
  y = y + params["b"][None, :, None, None]
  y = jnp.maximum(y, 0.0)
  y = y * params["scale"][None, :, None, None] + params["shift"][None, :, None, None]
  return jnp.einsum("ph,nohw,qw->nopq", A_c, y, B_c)


if __name__ == "__main__":
  key = jax.random.PRNGKey(0)
  kd, ke, kp, k1, k2, k3, k4, k5, k6 = jax.random.split(key, 9)

  # Small shapes consistent with the module: x_de (N, C_in, Hd, Wd);
  # x_en / x_pre spatial must exceed 2*Hd + 2 for the edge crop.
  N, C_in = 2, 32
  Cout = C_in // 2                     # 16
  Hd = Wd = 8                          # -> P = Q = 16, P*Q = 256 (lane-dense)
  Cen = Cpre = 4
  x_de = jax.random.normal(kd, (N, C_in, Hd, Wd), dtype=jnp.float32)
  x_en = jax.random.normal(ke, (N, Cen, 20, 20), dtype=jnp.float32)
  x_pre = jax.random.normal(kp, (N, Cpre, 20, 20), dtype=jnp.float32)

  # Deterministic synthetic conv + eval-mode BatchNorm parameters (folded).
  conv_w = 0.1 * jax.random.normal(k1, (Cout, C_in), dtype=jnp.float32)
  conv_b = 0.1 * jax.random.normal(k2, (Cout,), dtype=jnp.float32)
  gamma = 1.0 + 0.1 * jax.random.normal(k3, (Cout,), dtype=jnp.float32)
  beta = 0.1 * jax.random.normal(k4, (Cout,), dtype=jnp.float32)
  run_mean = 0.1 * jax.random.normal(k5, (Cout,), dtype=jnp.float32)
  run_var = jnp.abs(jax.random.normal(k6, (Cout,), dtype=jnp.float32)) + 0.5
  eps = 1e-5
  scale = gamma / jnp.sqrt(run_var + eps)
  shift = beta - run_mean * scale
  params = {"w": conv_w, "b": conv_b, "scale": scale, "shift": shift}

  H2, W2 = 2 * Hd, 2 * Wd
  h, w = x_en.shape[-2], x_en.shape[-1]
  A_c = jnp.asarray(_bilinear_matrix(H2, h)[2:H2 + 2], jnp.float32)
  B_c = jnp.asarray(_bilinear_matrix(W2, w)[2:W2 + 2], jnp.float32)
  ref_de = _ref_de_branch(x_de, params, A_c, B_c)

  # 1) Auto-picked cout_block (= Cout here since N > 1).
  out = upsample_block_tri(x_de, x_en, x_pre, params, edge_opt=True,
                           compute_dtype=jnp.float32)
  out = jax.block_until_ready(out)
  assert out.shape == (N, Cen + Cout + Cpre, H2, W2), out.shape
  np.testing.assert_allclose(np.asarray(out[:, Cen:Cen + Cout]),
                             np.asarray(ref_de), atol=1e-3, rtol=1e-3)
  np.testing.assert_allclose(np.asarray(out[:, :Cen]),
                             np.asarray(x_en[:, :, 2:H2 + 2, 2:W2 + 2]),
                             atol=0, rtol=0)
  np.testing.assert_allclose(np.asarray(out[:, Cen + Cout:]),
                             np.asarray(x_pre[:, :, 2:H2 + 2, 2:W2 + 2]),
                             atol=0, rtol=0)

  # 2) Explicit multi-block path (exercises n_cb > 1 and the resident-table
  #    dynamic slice).
  out_blk = upsample_block_tri(x_de, x_en, x_pre, params, edge_opt=True,
                               cout_block=8, compute_dtype=jnp.float32)
  out_blk = jax.block_until_ready(out_blk)
  np.testing.assert_allclose(np.asarray(out_blk[:, Cen:Cen + Cout]),
                             np.asarray(ref_de), atol=1e-3, rtol=1e-3)

  # 3) bf16 heavy operands (f32 MXU accumulation): the production dtype path.
  out_bf16 = upsample_block_tri(x_de, x_en, x_pre, params, edge_opt=True,
                                cout_block=8, compute_dtype=jnp.bfloat16)
  out_bf16 = jax.block_until_ready(out_bf16)
  np.testing.assert_allclose(np.asarray(out_bf16[:, Cen:Cen + Cout]),
                             np.asarray(ref_de), atol=5e-2, rtol=5e-2)

  print("KERNEL_OK")
</pallas_src>

<mosaic_0001>
module attributes {stable_mosaic.version = 11 : i64} {
  func.func @_upblock_kernel(%arg0: i32, %arg1: i32, %arg2: memref<1x32x64xf32, #tpu.memory_space<vmem>>, %arg3: memref<16x32xf32, #tpu.memory_space<vmem>>, %arg4: memref<16x3xf32, #tpu.memory_space<vmem>>, %arg5: memref<64x256xf32, #tpu.memory_space<vmem>>, %arg6: memref<1x16x256xf32, #tpu.memory_space<vmem>>) attributes {dimension_semantics = [#tpu.dimension_semantics<parallel>, #tpu.dimension_semantics<parallel>], iteration_bounds = array<i64: 2, 1>, scalar_prefetch = 0 : i64, scratch_operands = 0 : i64, tpu.core_type = #tpu.core_type<tc>, window_params = [{transform_indices = @transform_0, window_bounds = array<i64: 1, 32, 64>}, {transform_indices = @transform_1, window_bounds = array<i64: 16, 32>}, {pipeline_mode = #tpu.pipeline_mode<synchronous>, transform_indices = @transform_2, window_bounds = array<i64: 16, 3>}, {pipeline_mode = #tpu.pipeline_mode<synchronous>, transform_indices = @transform_3, window_bounds = array<i64: 64, 256>}, {transform_indices = @transform_4, window_bounds = array<i64: 1, 16, 256>}]} {
    %c0 = arith.constant 0 : index
    %c0_0 = arith.constant 0 : index
    %0 = vector.load %arg3[%c0, %c0_0] : memref<16x32xf32, #tpu.memory_space<vmem>>, vector<16x32xf32>
    %c0_1 = arith.constant 0 : index
    %c0_2 = arith.constant 0 : index
    %c0_3 = arith.constant 0 : index
    %1 = vector.load %arg2[%c0_1, %c0_2, %c0_3] : memref<1x32x64xf32, #tpu.memory_space<vmem>>, vector<1x32x64xf32>
    %2 = vector.shape_cast %1 : vector<1x32x64xf32> to vector<32x64xf32>
    %cst = arith.constant dense<0.000000e+00> : vector<16x64xf32>
    %3 = tpu.matmul %0, %2, %cst {dimension_numbers = #tpu.dot_dimension_numbers<[1], [0], [0], [1], [0, 0, 1, 1], [], []>} : vector<16x32xf32>, vector<32x64xf32>, vector<16x64xf32> -> vector<16x64xf32>
    %c16_i32 = arith.constant 16 : i32
    %4 = arith.muli %arg1, %c16_i32 : i32
    %5 = tpu.assume_multiple %4, 16 : i32
    %6 = arith.index_cast %5 : i32 to index
    %c0_4 = arith.constant 0 : index
    %7 = vector.load %arg4[%6, %c0_4] : memref<16x3xf32, #tpu.memory_space<vmem>>, vector<16x3xf32>
    %8 = vector.extract_strided_slice %7 {offsets = [0, 0], sizes = [16, 1], strides = [1, 1]} : vector<16x3xf32> to vector<16x1xf32>
    %9 = vector.broadcast %8 : vector<16x1xf32> to vector<16x64xf32>
    %10 = arith.addf %3, %9 : vector<16x64xf32>
    %cst_5 = arith.constant 0.000000e+00 : f32
    %11 = vector.broadcast %cst_5 : f32 to vector<16x64xf32>
    %12 = arith.maximumf %10, %11 : vector<16x64xf32>
    %13 = vector.extract_strided_slice %7 {offsets = [0, 1], sizes = [16, 1], strides = [1, 1]} : vector<16x3xf32> to vector<16x1xf32>
    %14 = vector.broadcast %13 : vector<16x1xf32> to vector<16x64xf32>
    %15 = arith.mulf %12, %14 : vector<16x64xf32>
    %16 = vector.extract_strided_slice %7 {offsets = [0, 2], sizes = [16, 1], strides = [1, 1]} : vector<16x3xf32> to vector<16x1xf32>
    %17 = vector.broadcast %16 : vector<16x1xf32> to vector<16x64xf32>
    %18 = arith.addf %15, %17 : vector<16x64xf32>
    %c0_6 = arith.constant 0 : index
    %c0_7 = arith.constant 0 : index
    %19 = vector.load %arg5[%c0_6, %c0_7] : memref<64x256xf32, #tpu.memory_space<vmem>>, vector<64x256xf32>
    %cst_8 = arith.constant dense<0.000000e+00> : vector<16x256xf32>
    %20 = tpu.matmul %18, %19, %cst_8 {dimension_numbers = #tpu.dot_dimension_numbers<[1], [0], [0], [1], [0, 0, 1, 1], [], []>} : vector<16x64xf32>, vector<64x256xf32>, vector<16x256xf32> -> vector<16x256xf32>
    %c0_9 = arith.constant 0 : index
    %c0_10 = arith.constant 0 : index
    %c0_11 = arith.constant 0 : index
    %21 = vector.load %arg6[%c0_9, %c0_10, %c0_11] : memref<1x16x256xf32, #tpu.memory_space<vmem>>, vector<1x16x256xf32>
    %22 = vector.shape_cast %21 : vector<1x16x256xf32> to vector<16x256xf32>
    %23 = vector.shape_cast %20 : vector<16x256xf32> to vector<1x16x256xf32>
    tpu.vector_store %arg6[%c0_9, %c0_10, %c0_11], %23 {strides = array<i32>} : memref<1x16x256xf32, #tpu.memory_space<vmem>>, vector<1x16x256xf32>,
    return
  }
  func.func @transform_0(%arg0: i32, %arg1: i32) -> (i32, i32, i32) {
    %c0_i32 = arith.constant 0 : i32
    %c0_i32_0 = arith.constant 0 : i32
    %c0_i32_1 = arith.constant 0 : i32
    return %arg0, %c0_i32, %c0_i32_0 : i32, i32, i32
  }
  func.func @transform_1(%arg0: i32, %arg1: i32) -> (i32, i32) {
    %c0_i32 = arith.constant 0 : i32
    %c0_i32_0 = arith.constant 0 : i32
    return %arg1, %c0_i32 : i32, i32
  }
  func.func @transform_2(%arg0: i32, %arg1: i32) -> (i32, i32) {
    %c0_i32 = arith.constant 0 : i32
    %c0_i32_0 = arith.constant 0 : i32
    %c0_i32_1 = arith.constant 0 : i32
    return %c0_i32, %c0_i32_0 : i32, i32
  }
  func.func @transform_3(%arg0: i32, %arg1: i32) -> (i32, i32) {
    %c0_i32 = arith.constant 0 : i32
    %c0_i32_0 = arith.constant 0 : i32
    %c0_i32_1 = arith.constant 0 : i32
    return %c0_i32, %c0_i32_0 : i32, i32
  }
  func.func @transform_4(%arg0: i32, %arg1: i32) -> (i32, i32, i32) {
    %c0_i32 = arith.constant 0 : i32
    %c0_i32_0 = arith.constant 0 : i32
    return %arg0, %arg1, %c0_i32 : i32, i32, i32
  }
}

</mosaic_0001>

<bundles_post_ra>
// kernel: upsample_block_tri.1
= control target key start
LH: loop header
LB: loop body
LE: loop exit
PB: predicated region body
PF: predicated region fallthrough
CT: control target
= control target key end

     0   :  { %s722_s15 = smov 0   ;;  %s724_s16 = smov 0   ;;  %s824_s0 = inlined_call_operand.vmem [shape: f32[2,32,64], index: 0, kind: input, shape index: {}]   ;;  %s825_s1 = inlined_call_operand.vmem [shape: f32[16,32], index: 1, kind: input, shape index: {}]   ;;  %s826_s2 = inlined_call_operand.vmem [shape: f32[16,3], index: 2, kind: input, shape index: {}]   ;;  %s827_s3 = inlined_call_operand.vmem [shape: f32[64,256], index: 3, kind: input, shape index: {}]   ;;  %s828_s4 = inlined_call_operand.vmem [shape: f32[2,16,256], index: 4, kind: output, shape index: {}]  }
   0x1   :  { %s726_s17 = smov 0  }
   0x2 LB: > { %s26_s18 = sadd.s32 1, %s687_s16  ;;  %p582_p0 = scmp.ge.s32.totalorder %s691_s17, 1  ;;  %s691_s17 = sphi %s726_s17, %s14_s17   ;;  %s687_s16 = sphi %s724_s16, %s830_s16   ;;  %s683_s15 = sphi %s722_s15, %s829_s15  }
   0x3   : > { %p28_p1 = scmp.ge.s32.totalorder %s26_s18, 2  ;;  %p187_p2 = scmp.lt.s32.totalorder %s691_s17, 3 }
   0x5   : > { %s832_s18 = smov (%p28_p1, %s26_s18), 0  ;;  %p188_p3 = pnand %p582_p0, %p187_p2 }
   0x6   : > { %p223_p4 = scmp.lt.s32.totalorder (!%p188_p3), %s683_s15, 1  ;;  %v245_v0 = vld [vmem:[%s825_s1] sm:$0xff] (!%p188_p3)  ;;  %vm265_vm0 = vcmask (!%p188_p3), 261120   ;;  %v693_v2 = vmov (!%p188_p3), 0   ;;  %v254_v3 = vld [vmem:[%s826_s2 + $0x8] sm:$0xff] (!%p188_p3)  ;;  %v372_v5 = vld [vmem:[%s827_s3 + $0x18] sm:$0xff] (!%p188_p3) }
   0x7   : > { %191 = sbr.rel (%p188_p3) target bundleno = 467 (0x1d3), region = 36  ;;  %v253_v1 = vld [vmem:[%s826_s2] sm:$0xff] (!%p188_p3)  ;;  %609 = vmatprep.mubr.msk.f32.mxu0 (!%p188_p3), %vm265_vm0, %v245_v0  ;;  %664 = vset.pattern.permute.xlu0 (!%p188_p3), %v693_v2  ;;  %v370_v4 = vld [vmem:[%s827_s3 + $0x8] sm:$0xff] (!%p188_p3)  ;;  %v694_v6 = vmov (!%p188_p3), 1   ;;  %v371_v9 = vld [vmem:[%s827_s3 + $0x10] sm:$0xff] (!%p188_p3)  ;;  %v695_v22 = vmov (!%p188_p3), 2  }
   0x8   : > { %257 = vperm.xlu0 (!%p188_p3), %664, %v253_v1   ;;  %665 = vset.pattern.permute.xlu1 (!%p188_p3), %v694_v6  ;;  %v620_v7 = vpack.c.bf16 (!%p188_p3), %v372_v5, %v370_v4  ;;  %v369_v8 = vld [vmem:[%s827_s3] sm:$0xff] (!%p188_p3)  ;;  %v374_v10 = vld [vmem:[%s827_s3 + $0x28] sm:$0xff] (!%p188_p3)  ;;  %v376_v12 = vld [vmem:[%s827_s3 + $0x38] sm:$0xff] (!%p188_p3)  ;;  %v696_v37 = vmov (!%p188_p3), 0.0   ;;  %vm385_vm1 = vcmask (!%p188_p3), 523264  }
   0x9   : > { %350 = vperm.xlu1 (!%p188_p3), %665, %v253_v1   ;;  %v622_v11 = vpack.c.bf16 (!%p188_p3), %v371_v9, %v369_v8  ;;  %v373_v13 = vld [vmem:[%s827_s3 + $0x20] sm:$0xff] (!%p188_p3)  ;;  %v375_v14 = vld [vmem:[%s827_s3 + $0x30] sm:$0xff] (!%p188_p3)  ;;  %v624_v15 = vpack.c.bf16 (!%p188_p3), %v376_v12, %v374_v10  ;;  %v246_v24 = vld [vmem:[%s825_s1 + $0x8] sm:$0xff] (!%p188_p3)  ;;  %456 = vmatprep.mubr.f32.mxu1 (!%p188_p3), %v696_v37 }
   0xa   : > { %621 = vmatprep.subr.bf16.mxu1 (!%p188_p3), %v620_v7  ;;  %v626_v16 = vpack.c.bf16 (!%p188_p3), %v375_v14, %v373_v13  ;;  %v378_v25 = vld [vmem:[%s827_s3 + $0x48] sm:$0xff] (!%p188_p3)  ;;  %v380_v26 = vld [vmem:[%s827_s3 + $0x58] sm:$0xff] (!%p188_p3)  ;;  %v377_v28 = vld [vmem:[%s827_s3 + $0x40] sm:$0xff] (!%p188_p3) }
   0xb   : > { %623 = vmatpush1.bf16.msra.mxu1 (!%p188_p3), %v622_v11  ;;  %v628_v27 = vpack.c.bf16 (!%p188_p3), %v380_v26, %v378_v25  ;;  %v379_v29 = vld [vmem:[%s827_s3 + $0x50] sm:$0xff] (!%p188_p3)  ;;  %v382_v31 = vld [vmem:[%s827_s3 + $0x68] sm:$0xff] (!%p188_p3)  ;;  %v384_v32 = vld [vmem:[%s827_s3 + $0x78] sm:$0xff] (!%p188_p3) }
   0xc   : > { %262 = vperm.xlu0 (!%p188_p3), %664, %v254_v3   ;;  %625 = vmatprep.subr.bf16.mxu1 (!%p188_p3), %v624_v15  ;;  %v630_v30 = vpack.c.bf16 (!%p188_p3), %v379_v29, %v377_v28  ;;  %v632_v33 = vpack.c.bf16 (!%p188_p3), %v384_v32, %v382_v31  ;;  %v381_v34 = vld [vmem:[%s827_s3 + $0x60] sm:$0xff] (!%p188_p3)  ;;  %v383_v35 = vld [vmem:[%s827_s3 + $0x70] sm:$0xff] (!%p188_p3) }
   0xd   : > { %666 = vset.pattern.permute.xlu1 (!%p188_p3), %v695_v22  ;;  %v634_v36 = vpack.c.bf16 (!%p188_p3), %v383_v35, %v381_v34 }
   0xe   : > { %s834_s15 = smov (!%p223_p4, %s683_s15), 1  ;;  %360 = vperm.xlu1 %666, %v253_v1  }
   0xf   : > { %s593_s19 = sshll.u32 %s834_s15, 5  ;;  %627 = vmatpush1.bf16.msra.mxu1 %v626_v16 }
  0x10   : > { %s227_s22 = scalar_lea.vmem %s824_s0, %s593_s19  ;;  %667 = vset.pattern.permute.xlu0 %v694_v6  ;;  %629 = vmatprep.subr.bf16.mxu1 %v628_v27 }
  0x11   : > { %v247_v17 = vld [vmem:[%s227_s22] sm:$0xff]  ;;  %v248_v18 = vld [vmem:[%s227_s22 + $0x8] sm:$0xff]  ;;  %v249_v19 = vld [vmem:[%s227_s22 + $0x10] sm:$0xff]  ;;  %354 = vperm.xlu0 %667, %v254_v3  }
  0x12   : > { %v612_v20 = vpack.c.bf16 %v248_v18, %v247_v17  ;;  %v250_v21 = vld [vmem:[%s227_s22 + $0x18] sm:$0xff]  ;;  %364 = vperm.xlu1 %666, %v254_v3   ;;  %s243_s22 = scalar_lea.vmem %s828_s4, %s593_s19 }
  0x13   : > { %v616_v23 = vpack.c.bf16 %v250_v21, %v249_v19  ;;  %631 = vmatpush1.bf16.msra.mxu1 %v630_v30 }
  0x14   : > { %613 = vmatprep.subr.bf16.mxu0 %v612_v20  ;;  %633 = vmatprep.subr.bf16.mxu1 %v632_v33 }
  0x15   : > { %615 = vmatpush3.bf16.msra.mxu0 %v612_v20  ;;  %668 = vset.pattern.permute.xlu0 %v695_v22 }
  0x16   : > { %617 = vmatprep.subr.bf16.mxu0 %v616_v23 }
  0x17   : > { %635 = vmatpush1.bf16.msra.mxu1 %v634_v36 }
  0x19   : > { %619 = vmatpush3.bf16.msra.mxu0 %v616_v23 }
  0x1c   : > { %610 = vmatmul.mubr.msk.f32.vlgmr.msra.gmra.mrb[0].mxu0 %vm265_vm0, %v246_v24 }
  0x87   : > { %v258_v38 = vpop.permute.xlu0 %257 }
  0x88   : > { %v351_v39 = vpop.permute.xlu1 %350 }
  0x8b   : > { %v263_v40 = vpop.permute.xlu0 %262 }
  0x8d   : > { %v361_v45 = vpop.permute.xlu1 %360 }
  0x90   : > { %v355_v48 = vpop.permute.xlu0 %354 }
  0x91   : > { %v365_v52 = vpop.permute.xlu1 %364 }
  0xef   : > { %v611_v41 = vpop.f32.mrb[0].mxu0 }
  0xf0   : > { %v344_v42 = vadd.f32 %v611_v41, %v263_v40  ;;  %v338_v43 = vpop.f32.mrb[1].mxu0 }
  0xf1   : > { %v339_v44 = vadd.f32 %v338_v43, %v258_v38 }
  0xf2   : > { %v348_v46 = vmax.f32 %v344_v42, 0.0 }
  0xf3   : > { %v347_v47 = vmax.f32 %v339_v44, 0.0 }
  0xf4   : > { %v358_v51 = vmul.f32 %v355_v48, %v348_v46 }
  0xf5   : > { %v357_v49 = vmul.f32 %v351_v39, %v347_v47 }
  0xf6   : > { %v368_v53 = vadd.f32 %v365_v52, %v358_v51 }
  0xf7   : > { %v367_v50 = vadd.f32 %v361_v45, %v357_v49 }
  0xf9   : > { %589 = vmatmul.mubr.msk.f32.vlgmr.msra.gmra.mrb[0].mxu1 %vm385_vm1, %v367_v50 }
  0xfa   : > { %462 = vmatprep.mubr.f32.mxu1 %v696_v37 }
  0xfd   : > { %590 = vmatmul.mubr.msk.f32.gmra.mrb[2].mxu1 %vm385_vm1, %v368_v53 }
 0x1cc   : > { %v458_v54 = vpop.f32.mrb[0].mxu1 }
 0x1cd   : > { %469 = vst [vmem:[%s243_s22] sm:$0xff] %v458_v54  ;;  %v460_v55 = vpop.f32.mrb[1].mxu1 }
 0x1ce   : > { %470 = vst [vmem:[%s243_s22 + $0x8] sm:$0xff] %v460_v55 }
 0x1d0   : > { %v464_v56 = vpop.f32.mrb[2].mxu1 }
 0x1d1   : > { %471 = vst [vmem:[%s243_s22 + $0x10] sm:$0xff] %v464_v56  ;;  %v466_v57 = vpop.f32.mrb[3].mxu1 }
 0x1d2   : > { %472 = vst [vmem:[%s243_s22 + $0x18] sm:$0xff] %v466_v57 }
 0x1d3 PF: > { %s14_s17 = sadd.s32 1, %s691_s17   ;;  %s829_s15 = smov %s687_s16 }
 0x1d4   : > { %p11_p5 = scmp.ge.s32.totalorder %s14_s17, 4   ;;  %s830_s16 = smov %s832_s18 }
 0x1d6   :  { %13 = sbr.rel (!%p11_p5) target bundleno = 2 (0x2), region = 70 }

</bundles_post_ra>
